<compile_context>
chip_gen: v7x
topology: tpu7x:2x2x1
jax: 0.10.0
libtpu: 0.0.40
codegen_flags: <defaults>
</compile_context>

<pallas_src>
import functools

import numpy as np

import jax
import jax.numpy as jnp
from jax.experimental import pallas as pl
from jax.experimental.pallas import tpu as pltpu


def _pick_hw_tile(HW, Cout):
    """Largest lane-dense HW tile for pass 2 that divides HW and fits ~8 MiB of
    double-buffered blocks (safe under v5e's 16 MiB default scoped VMEM)."""
    budget = 8 * 1024 * 1024
    # per step: 2 x bf16 in (Cout*hwt*2) + 2 x f32 out (Cout*hwt*4) ~= 12*Cout*hwt
    cap = max(128, budget // (12 * max(Cout, 1)))
    for t in (4096, 2048, 1024, 512, 256, 128):
        if t <= cap and t <= HW and HW % t == 0:
            return t
    return HW


def _conv_stats_kernel(w_ref, x_ref, m_ref, y_ref, s_ref, ss_ref, xs_ref,
                       *, KH, KW, H, W, Cin):
    """Pass 1: 3x3 'same' conv of one image (bias-free) + per-channel partial stats.

    w_ref:  (Cout_tile, KH*KW*Cin)      bf16   tap-major flattened weights
    x_ref:  (1, Cin, H*W + 2*(W+1))     bf16   one image, spatial flattened + flat pad
    m_ref:  (KH*KW, H*W)                f32    per-tap column-validity mask (dw!=0 taps)
    y_ref:  (1, Cout_tile, H*W)         bf16   conv output (pre-BN)
    s_ref:  (1, Cout_tile, 1)           f32    per-channel sum over this image
    ss_ref: (1, Cout_tile, 1)           f32    per-channel sum of squares
    xs_ref: (KH*KW*Cin, H*W)            bf16   VMEM scratch: staged shifted slices
    """
    HW = H * W
    P = W + 1  # flat zero-padding on each side of the lane axis (matches wrapper)

    # Stage the 9 shifted (and edge-masked) slices once per image; reused across
    # every Cout tile (grid axis 1 is the inner, sequential "arbitrary" axis).
    @pl.when(pl.program_id(1) == 0)
    def _stage():
        for kh in range(KH):
            dh = kh - KH // 2
            for kw in range(KW):
                dw = kw - KW // 2
                k = kh * KW + kw
                # shifted view: xs[:, p] = x_flat[:, p + dh*W + dw] (static VMEM slice)
                start = P + dh * W + dw
                xs = x_ref[0, :, start:start + HW]                    # (Cin, HW) bf16
                if dw != 0:
                    # Zero columns whose horizontal tap falls outside the image.
                    # (Row overflow is already zero via the W+1 flat pad.)
                    # Mask in f32 (v5e has no bf16 VALU), then back to bf16.
                    xs = (xs.astype(jnp.float32) * m_ref[k:k + 1, :]).astype(jnp.bfloat16)
                xs_ref[k * Cin:(k + 1) * Cin, :] = xs

    # Single MXU matmul, K = 9*Cin: full contraction fill, one accumulator touch.
    acc = jnp.dot(w_ref[...], xs_ref[...],
                  preferred_element_type=jnp.float32)                 # (Cout_t, HW) f32
    y_ref[0] = acc.astype(y_ref.dtype)
    s_ref[0] = jnp.sum(acc, axis=1, keepdims=True)
    ss_ref[0] = jnp.sum(acc * acc, axis=1, keepdims=True)


def _bn_relu_kernel(y_ref, a_ref, c_ref, o_ref):
    """Pass 2: folded BatchNorm (per-channel scale+shift) + ReLU; single fused store."""
    y = y_ref[0].astype(jnp.float32)
    o_ref[0] = jnp.maximum(y * a_ref[...] + c_ref[...],
                           jnp.float32(0.0)).astype(o_ref.dtype)


def cbr2d(x, w, b, gamma, beta, eps=1e-5):
    """Forward of CBR2d (Conv2d k=3,s=1,p=1,bias -> BatchNorm2d(train) -> ReLU).

    x: (N, Cin, H, W) NCHW; w: (Cout, Cin, 3, 3); b/gamma/beta: (Cout,).
    The conv bias `b` is accepted but unused: under training-mode BatchNorm the
    per-channel bias cancels exactly in (y - mean).
    """
    del b
    N, Cin, H, W = x.shape
    Cout, _, KH, KW = w.shape
    HW = H * W
    P = W + 1

    # ---- lane-dense layouts; bf16 matmul operands (deliberate precision choice) ----
    x2 = x.reshape(N, Cin, HW).astype(jnp.bfloat16)
    xp = jnp.pad(x2, ((0, 0), (0, 0), (P, P)))                        # (N, Cin, HW+2P)
    # tap-major weight flatten: column index = (kh*KW + kw)*Cin + ci
    w2 = w.transpose(0, 2, 3, 1).reshape(Cout, KH * KW * Cin).astype(jnp.bfloat16)

    # Per-tap column-validity masks (compile-time constant; only dw!=0 taps used).
    cols = np.arange(W)
    masks = np.ones((KH * KW, HW), dtype=np.float32)
    for kh in range(KH):
        for kw in range(KW):
            dw = kw - KW // 2
            if dw != 0:
                valid = ((cols + dw >= 0) & (cols + dw <= W - 1)).astype(np.float32)
                masks[kh * KW + kw] = np.tile(valid, H)
    masks = jnp.asarray(masks)

    # Cout tile: cap at 128 (matches v5e MXU tiles, safe accumulator/VMEM pressure
    # on v7x's smaller VMEM); fall back to full Cout for small layers.
    coutt = 128 if Cout % 128 == 0 else Cout
    n_cout_tiles = Cout // coutt

    # ---- pass 1: staged shifted slab + one K=9*Cin MXU matmul + channel stats ----
    # TODO(synk): for very large Cin*H*W add an HW-tile grid axis to pass 1 (halo
    # handling in the staging step); one image per grid step is plenty here.
    y, s, ss = pl.pallas_call(
        functools.partial(_conv_stats_kernel, KH=KH, KW=KW, H=H, W=W, Cin=Cin),
        out_shape=(
            jax.ShapeDtypeStruct((N, Cout, HW), jnp.bfloat16),
            jax.ShapeDtypeStruct((N, Cout, 1), jnp.float32),
            jax.ShapeDtypeStruct((N, Cout, 1), jnp.float32),
        ),
        grid=(N, n_cout_tiles),
        in_specs=[
            pl.BlockSpec((coutt, KH * KW * Cin), lambda n, j: (j, 0)),
            pl.BlockSpec((1, Cin, HW + 2 * P), lambda n, j: (n, 0, 0)),
            pl.BlockSpec((KH * KW, HW), lambda n, j: (0, 0)),
        ],
        out_specs=(
            pl.BlockSpec((1, coutt, HW), lambda n, j: (n, j, 0)),
            pl.BlockSpec((1, coutt, 1), lambda n, j: (n, j, 0)),
            pl.BlockSpec((1, coutt, 1), lambda n, j: (n, j, 0)),
        ),
        scratch_shapes=[pltpu.VMEM((KH * KW * Cin, HW), jnp.bfloat16)],
        compiler_params=pltpu.CompilerParams(
            # batch axis parallel (megacore shards images on v7x); Cout-tile axis
            # must be sequential so the per-image staged slab is valid for j > 0.
            dimension_semantics=("parallel", "arbitrary"),
            vmem_limit_bytes=32 * 1024 * 1024),
    )(w2, xp, masks)

    # ---- tiny per-channel reduction + BN fold (negligible, plain JAX) ----
    cnt = jnp.float32(N * HW)
    mean = jnp.sum(s, axis=0) / cnt                                    # (Cout, 1)
    # Biased variance (BatchNorm training mode), f32 accumulation.  For very large
    # activations prefer a mean-subtracting second pass (cancellation); fine here.
    var = jnp.maximum(jnp.sum(ss, axis=0) / cnt - mean * mean, 0.0)
    a = gamma.reshape(Cout, 1).astype(jnp.float32) * jax.lax.rsqrt(var + jnp.float32(eps))
    c = beta.reshape(Cout, 1).astype(jnp.float32) - mean * a

    # ---- pass 2: folded scale+shift + ReLU (tiled, mem-bound, lane-dense) ----
    # (No input_output_aliases: y is bf16, output is f32, so no in-place overwrite.)
    hwt = _pick_hw_tile(HW, Cout)
    out = pl.pallas_call(
        _bn_relu_kernel,
        out_shape=jax.ShapeDtypeStruct((N, Cout, HW), jnp.float32),
        grid=(N, HW // hwt),
        in_specs=[
            pl.BlockSpec((1, Cout, hwt), lambda n, t: (n, 0, t)),
            pl.BlockSpec((Cout, 1), lambda n, t: (0, 0)),
            pl.BlockSpec((Cout, 1), lambda n, t: (0, 0)),
        ],
        out_specs=pl.BlockSpec((1, Cout, hwt), lambda n, t: (n, 0, t)),
        compiler_params=pltpu.CompilerParams(
            dimension_semantics=("parallel", "parallel"),
            vmem_limit_bytes=32 * 1024 * 1024),
    )(y, a, c)

    # Free metadata reshape back to NCHW (no transpose pass).
    return out.reshape(N, Cout, H, W)


def cbr2d_reference(x, w, b, gamma, beta, eps=1e-5):
    """Pure-JAX reference matching PyTorch CBR2d forward (training-mode BN)."""
    y = jax.lax.conv_general_dilated(
        x, w, window_strides=(1, 1), padding=((1, 1), (1, 1)),
        dimension_numbers=("NCHW", "OIHW", "NCHW"))
    y = y + b[None, :, None, None]
    mean = y.mean(axis=(0, 2, 3), keepdims=True)
    var = ((y - mean) ** 2).mean(axis=(0, 2, 3), keepdims=True)
    yn = (y - mean) / jnp.sqrt(var + eps)
    yn = yn * gamma[None, :, None, None] + beta[None, :, None, None]
    return jnp.maximum(yn, 0.0)


if __name__ == "__main__":
    # CBR2d(in_channels=4, out_channels=8, kernel_size=3, stride=1, padding=1,
    #       bias=True, norm='bnorm', relu=0.0)
    N, Cin, Cout, H, W = 2, 4, 8, 16, 16
    key = jax.random.PRNGKey(0)
    kx, kw_, kb, kg, kbe = jax.random.split(key, 5)

    x = jax.random.normal(kx, (N, Cin, H, W), dtype=jnp.float32)
    w = jax.random.normal(kw_, (Cout, Cin, 3, 3), dtype=jnp.float32) * 0.1
    b = jax.random.normal(kb, (Cout,), dtype=jnp.float32) * 0.1
    gamma = 1.0 + 0.1 * jax.random.normal(kg, (Cout,), dtype=jnp.float32)
    beta = 0.1 * jax.random.normal(kbe, (Cout,), dtype=jnp.float32)
    # TODO(synk): BatchNorm running-stat updates (training side effect) are not
    # modeled; they do not affect the forward output in training mode.

    out = jax.block_until_ready(cbr2d(x, w, b, gamma, beta))
    ref = jax.block_until_ready(cbr2d_reference(x, w, b, gamma, beta))

    assert out.shape == (N, Cout, H, W), out.shape
    # bf16 matmul operands + bf16 intermediate y are deliberate precision choices;
    # observed error is ~1e-2 relative, well inside 2e-2.
    max_err = float(jnp.max(jnp.abs(out - ref)))
    assert jnp.allclose(out, ref, rtol=2e-2, atol=2e-2), max_err
    print("KERNEL_OK")
</pallas_src>

<mosaic_0001>
module attributes {stable_mosaic.version = 11 : i64} {
  func.func @_conv_stats_kernel(%arg0: i32, %arg1: i32, %arg2: memref<8x36xbf16, #tpu.memory_space<vmem>>, %arg3: memref<1x4x290xbf16, #tpu.memory_space<vmem>>, %arg4: memref<9x256xf32, #tpu.memory_space<vmem>>, %arg5: memref<1x8x256xbf16, #tpu.memory_space<vmem>>, %arg6: memref<1x8x1xf32, #tpu.memory_space<vmem>>, %arg7: memref<1x8x1xf32, #tpu.memory_space<vmem>>, %arg8: memref<36x256xbf16, #tpu.memory_space<vmem>>) attributes {dimension_semantics = [#tpu.dimension_semantics<parallel>, #tpu.dimension_semantics<arbitrary>], iteration_bounds = array<i64: 2, 1>, scalar_prefetch = 0 : i64, scratch_operands = 1 : i64, tpu.core_type = #tpu.core_type<tc>, window_params = [{transform_indices = @transform_0, window_bounds = array<i64: 8, 36>}, {transform_indices = @transform_1, window_bounds = array<i64: 1, 4, 290>}, {pipeline_mode = #tpu.pipeline_mode<synchronous>, transform_indices = @transform_2, window_bounds = array<i64: 9, 256>}, {transform_indices = @transform_3, window_bounds = array<i64: 1, 8, 256>}, {transform_indices = @transform_4, window_bounds = array<i64: 1, 8, 1>}, {transform_indices = @transform_5, window_bounds = array<i64: 1, 8, 1>}]} {
    %c0_i32 = arith.constant 0 : i32
    %0 = arith.cmpi eq, %arg1, %c0_i32 : i32
    %1 = arith.extui %0 : i1 to i32
    %c0_i32_0 = arith.constant 0 : i32
    %2 = arith.cmpi ne, %1, %c0_i32_0 : i32
    scf.if %2 {
      %c0_15 = arith.constant 0 : index
      %c0_16 = arith.constant 0 : index
      %c0_17 = arith.constant 0 : index
      %21 = vector.load %arg3[%c0_15, %c0_16, %c0_17] : memref<1x4x290xbf16, #tpu.memory_space<vmem>>, vector<1x4x256xbf16>
      %22 = vector.shape_cast %21 : vector<1x4x256xbf16> to vector<4x256xbf16>
      %23 = arith.extf %22 : vector<4x256xbf16> to vector<4x256xf32>
      %c0_18 = arith.constant 0 : index
      %c0_19 = arith.constant 0 : index
      %24 = vector.load %arg4[%c0_18, %c0_19] : memref<9x256xf32, #tpu.memory_space<vmem>>, vector<1x256xf32>
      %25 = vector.broadcast %24 : vector<1x256xf32> to vector<4x256xf32>
      %26 = arith.mulf %23, %25 : vector<4x256xf32>
      %27 = arith.truncf %26 : vector<4x256xf32> to vector<4x256xbf16>
      %c0_20 = arith.constant 0 : index
      %c0_21 = arith.constant 0 : index
      %28 = vector.load %arg8[%c0_20, %c0_21] : memref<36x256xbf16, #tpu.memory_space<vmem>>, vector<4x256xbf16>
      tpu.vector_store %arg8[%c0_20, %c0_21], %27 {strides = array<i32>} : memref<36x256xbf16, #tpu.memory_space<vmem>>, vector<4x256xbf16>,
      %c0_22 = arith.constant 0 : index
      %c0_23 = arith.constant 0 : index
      %c1 = arith.constant 1 : index
      %29 = vector.load %arg3[%c0_22, %c0_23, %c1] : memref<1x4x290xbf16, #tpu.memory_space<vmem>>, vector<1x4x256xbf16>
      %30 = vector.shape_cast %29 : vector<1x4x256xbf16> to vector<4x256xbf16>
      %c4 = arith.constant 4 : index
      %c0_24 = arith.constant 0 : index
      %31 = vector.load %arg8[%c4, %c0_24] : memref<36x256xbf16, #tpu.memory_space<vmem>>, vector<4x256xbf16>
      tpu.vector_store %arg8[%c4, %c0_24], %30 {strides = array<i32>} : memref<36x256xbf16, #tpu.memory_space<vmem>>, vector<4x256xbf16>,
      %c0_25 = arith.constant 0 : index
      %c0_26 = arith.constant 0 : index
      %c2 = arith.constant 2 : index
      %32 = vector.load %arg3[%c0_25, %c0_26, %c2] : memref<1x4x290xbf16, #tpu.memory_space<vmem>>, vector<1x4x256xbf16>
      %33 = vector.shape_cast %32 : vector<1x4x256xbf16> to vector<4x256xbf16>
      %34 = arith.extf %33 : vector<4x256xbf16> to vector<4x256xf32>
      %c2_27 = arith.constant 2 : index
      %c0_28 = arith.constant 0 : index
      %35 = vector.load %arg4[%c2_27, %c0_28] : memref<9x256xf32, #tpu.memory_space<vmem>>, vector<1x256xf32>
      %36 = vector.broadcast %35 : vector<1x256xf32> to vector<4x256xf32>
      %37 = arith.mulf %34, %36 : vector<4x256xf32>
      %38 = arith.truncf %37 : vector<4x256xf32> to vector<4x256xbf16>
      %c8 = arith.constant 8 : index
      %c0_29 = arith.constant 0 : index
      %39 = vector.load %arg8[%c8, %c0_29] : memref<36x256xbf16, #tpu.memory_space<vmem>>, vector<4x256xbf16>
      tpu.vector_store %arg8[%c8, %c0_29], %38 {strides = array<i32>} : memref<36x256xbf16, #tpu.memory_space<vmem>>, vector<4x256xbf16>,
      %c0_30 = arith.constant 0 : index
      %c0_31 = arith.constant 0 : index
      %c16 = arith.constant 16 : index
      %40 = vector.load %arg3[%c0_30, %c0_31, %c16] : memref<1x4x290xbf16, #tpu.memory_space<vmem>>, vector<1x4x256xbf16>
      %41 = vector.shape_cast %40 : vector<1x4x256xbf16> to vector<4x256xbf16>
      %42 = arith.extf %41 : vector<4x256xbf16> to vector<4x256xf32>
      %c3 = arith.constant 3 : index
      %c0_32 = arith.constant 0 : index
      %43 = vector.load %arg4[%c3, %c0_32] : memref<9x256xf32, #tpu.memory_space<vmem>>, vector<1x256xf32>
      %44 = vector.broadcast %43 : vector<1x256xf32> to vector<4x256xf32>
      %45 = arith.mulf %42, %44 : vector<4x256xf32>
      %46 = arith.truncf %45 : vector<4x256xf32> to vector<4x256xbf16>
      %c12 = arith.constant 12 : index
      %c0_33 = arith.constant 0 : index
      %47 = vector.load %arg8[%c12, %c0_33] : memref<36x256xbf16, #tpu.memory_space<vmem>>, vector<4x256xbf16>
      tpu.vector_store %arg8[%c12, %c0_33], %46 {strides = array<i32>} : memref<36x256xbf16, #tpu.memory_space<vmem>>, vector<4x256xbf16>,
      %c0_34 = arith.constant 0 : index
      %c0_35 = arith.constant 0 : index
      %c17 = arith.constant 17 : index
      %48 = vector.load %arg3[%c0_34, %c0_35, %c17] : memref<1x4x290xbf16, #tpu.memory_space<vmem>>, vector<1x4x256xbf16>
      %49 = vector.shape_cast %48 : vector<1x4x256xbf16> to vector<4x256xbf16>
      %c16_36 = arith.constant 16 : index
      %c0_37 = arith.constant 0 : index
      %50 = vector.load %arg8[%c16_36, %c0_37] : memref<36x256xbf16, #tpu.memory_space<vmem>>, vector<4x256xbf16>
      tpu.vector_store %arg8[%c16_36, %c0_37], %49 {strides = array<i32>} : memref<36x256xbf16, #tpu.memory_space<vmem>>, vector<4x256xbf16>,
      %c0_38 = arith.constant 0 : index
      %c0_39 = arith.constant 0 : index
      %c18 = arith.constant 18 : index
      %51 = vector.load %arg3[%c0_38, %c0_39, %c18] : memref<1x4x290xbf16, #tpu.memory_space<vmem>>, vector<1x4x256xbf16>
      %52 = vector.shape_cast %51 : vector<1x4x256xbf16> to vector<4x256xbf16>
      %53 = arith.extf %52 : vector<4x256xbf16> to vector<4x256xf32>
      %c5 = arith.constant 5 : index
      %c0_40 = arith.constant 0 : index
      %54 = vector.load %arg4[%c5, %c0_40] : memref<9x256xf32, #tpu.memory_space<vmem>>, vector<1x256xf32>
      %55 = vector.broadcast %54 : vector<1x256xf32> to vector<4x256xf32>
      %56 = arith.mulf %53, %55 : vector<4x256xf32>
      %57 = arith.truncf %56 : vector<4x256xf32> to vector<4x256xbf16>
      %c20 = arith.constant 20 : index
      %c0_41 = arith.constant 0 : index
      %58 = vector.load %arg8[%c20, %c0_41] : memref<36x256xbf16, #tpu.memory_space<vmem>>, vector<4x256xbf16>
      tpu.vector_store %arg8[%c20, %c0_41], %57 {strides = array<i32>} : memref<36x256xbf16, #tpu.memory_space<vmem>>, vector<4x256xbf16>,
      %c0_42 = arith.constant 0 : index
      %c0_43 = arith.constant 0 : index
      %c32 = arith.constant 32 : index
      %59 = vector.load %arg3[%c0_42, %c0_43, %c32] : memref<1x4x290xbf16, #tpu.memory_space<vmem>>, vector<1x4x256xbf16>
      %60 = vector.shape_cast %59 : vector<1x4x256xbf16> to vector<4x256xbf16>
      %61 = arith.extf %60 : vector<4x256xbf16> to vector<4x256xf32>
      %c6 = arith.constant 6 : index
      %c0_44 = arith.constant 0 : index
      %62 = vector.load %arg4[%c6, %c0_44] : memref<9x256xf32, #tpu.memory_space<vmem>>, vector<1x256xf32>
      %63 = vector.broadcast %62 : vector<1x256xf32> to vector<4x256xf32>
      %64 = arith.mulf %61, %63 : vector<4x256xf32>
      %65 = arith.truncf %64 : vector<4x256xf32> to vector<4x256xbf16>
      %c24 = arith.constant 24 : index
      %c0_45 = arith.constant 0 : index
      %66 = vector.load %arg8[%c24, %c0_45] : memref<36x256xbf16, #tpu.memory_space<vmem>>, vector<4x256xbf16>
      tpu.vector_store %arg8[%c24, %c0_45], %65 {strides = array<i32>} : memref<36x256xbf16, #tpu.memory_space<vmem>>, vector<4x256xbf16>,
      %c0_46 = arith.constant 0 : index
      %c0_47 = arith.constant 0 : index
      %c33 = arith.constant 33 : index
      %67 = vector.load %arg3[%c0_46, %c0_47, %c33] : memref<1x4x290xbf16, #tpu.memory_space<vmem>>, vector<1x4x256xbf16>
      %68 = vector.shape_cast %67 : vector<1x4x256xbf16> to vector<4x256xbf16>
      %c28 = arith.constant 28 : index
      %c0_48 = arith.constant 0 : index
      %69 = vector.load %arg8[%c28, %c0_48] : memref<36x256xbf16, #tpu.memory_space<vmem>>, vector<4x256xbf16>
      tpu.vector_store %arg8[%c28, %c0_48], %68 {strides = array<i32>} : memref<36x256xbf16, #tpu.memory_space<vmem>>, vector<4x256xbf16>,
      %c0_49 = arith.constant 0 : index
      %c0_50 = arith.constant 0 : index
      %c34 = arith.constant 34 : index
      %70 = vector.load %arg3[%c0_49, %c0_50, %c34] : memref<1x4x290xbf16, #tpu.memory_space<vmem>>, vector<1x4x256xbf16>
      %71 = vector.shape_cast %70 : vector<1x4x256xbf16> to vector<4x256xbf16>
      %72 = arith.extf %71 : vector<4x256xbf16> to vector<4x256xf32>
      %c8_51 = arith.constant 8 : index
      %c0_52 = arith.constant 0 : index
      %73 = vector.load %arg4[%c8_51, %c0_52] : memref<9x256xf32, #tpu.memory_space<vmem>>, vector<1x256xf32>
      %74 = vector.broadcast %73 : vector<1x256xf32> to vector<4x256xf32>
      %75 = arith.mulf %72, %74 : vector<4x256xf32>
      %76 = arith.truncf %75 : vector<4x256xf32> to vector<4x256xbf16>
      %c32_53 = arith.constant 32 : index
      %c0_54 = arith.constant 0 : index
      %77 = vector.load %arg8[%c32_53, %c0_54] : memref<36x256xbf16, #tpu.memory_space<vmem>>, vector<4x256xbf16>
      tpu.vector_store %arg8[%c32_53, %c0_54], %76 {strides = array<i32>} : memref<36x256xbf16, #tpu.memory_space<vmem>>, vector<4x256xbf16>,
    } else {
    }
    %c0 = arith.constant 0 : index
    %c0_1 = arith.constant 0 : index
    %3 = vector.load %arg2[%c0, %c0_1] : memref<8x36xbf16, #tpu.memory_space<vmem>>, vector<8x36xbf16>
    %c0_2 = arith.constant 0 : index
    %c0_3 = arith.constant 0 : index
    %4 = vector.load %arg8[%c0_2, %c0_3] : memref<36x256xbf16, #tpu.memory_space<vmem>>, vector<36x256xbf16>
    %cst = arith.constant dense<0.000000e+00> : vector<8x256xf32>
    %5 = tpu.matmul %3, %4, %cst {dimension_numbers = #tpu.dot_dimension_numbers<[1], [0], [0], [1], [0, 0, 1, 1], [], []>} : vector<8x36xbf16>, vector<36x256xbf16>, vector<8x256xf32> -> vector<8x256xf32>
    %6 = arith.truncf %5 : vector<8x256xf32> to vector<8x256xbf16>
    %c0_4 = arith.constant 0 : index
    %c0_5 = arith.constant 0 : index
    %c0_6 = arith.constant 0 : index
    %7 = vector.load %arg5[%c0_4, %c0_5, %c0_6] : memref<1x8x256xbf16, #tpu.memory_space<vmem>>, vector<1x8x256xbf16>
    %8 = vector.shape_cast %7 : vector<1x8x256xbf16> to vector<8x256xbf16>
    %9 = vector.shape_cast %6 : vector<8x256xbf16> to vector<1x8x256xbf16>
    tpu.vector_store %arg5[%c0_4, %c0_5, %c0_6], %9 {strides = array<i32>} : memref<1x8x256xbf16, #tpu.memory_space<vmem>>, vector<1x8x256xbf16>,
    %cst_7 = arith.constant dense<0.000000e+00> : vector<8xf32>
    %10 = vector.multi_reduction <add>, %5, %cst_7 [1] : vector<8x256xf32> to vector<8xf32>
    %11 = vector.shape_cast %10 : vector<8xf32> to vector<8x1xf32>
    %c0_8 = arith.constant 0 : index
    %c0_9 = arith.constant 0 : index
    %c0_10 = arith.constant 0 : index
    %12 = vector.load %arg6[%c0_8, %c0_9, %c0_10] : memref<1x8x1xf32, #tpu.memory_space<vmem>>, vector<1x8x1xf32>
    %13 = vector.shape_cast %12 : vector<1x8x1xf32> to vector<8x1xf32>
    %14 = vector.shape_cast %11 : vector<8x1xf32> to vector<1x8x1xf32>
    tpu.vector_store %arg6[%c0_8, %c0_9, %c0_10], %14 {strides = array<i32>} : memref<1x8x1xf32, #tpu.memory_space<vmem>>, vector<1x8x1xf32>,
    %15 = arith.mulf %5, %5 : vector<8x256xf32>
    %cst_11 = arith.constant dense<0.000000e+00> : vector<8xf32>
    %16 = vector.multi_reduction <add>, %15, %cst_11 [1] : vector<8x256xf32> to vector<8xf32>
    %17 = vector.shape_cast %16 : vector<8xf32> to vector<8x1xf32>
    %c0_12 = arith.constant 0 : index
    %c0_13 = arith.constant 0 : index
    %c0_14 = arith.constant 0 : index
    %18 = vector.load %arg7[%c0_12, %c0_13, %c0_14] : memref<1x8x1xf32, #tpu.memory_space<vmem>>, vector<1x8x1xf32>
    %19 = vector.shape_cast %18 : vector<1x8x1xf32> to vector<8x1xf32>
    %20 = vector.shape_cast %17 : vector<8x1xf32> to vector<1x8x1xf32>
    tpu.vector_store %arg7[%c0_12, %c0_13, %c0_14], %20 {strides = array<i32>} : memref<1x8x1xf32, #tpu.memory_space<vmem>>, vector<1x8x1xf32>,
    return
  }
  func.func @transform_0(%arg0: i32, %arg1: i32) -> (i32, i32) {
    %c0_i32 = arith.constant 0 : i32
    %c0_i32_0 = arith.constant 0 : i32
    return %arg1, %c0_i32 : i32, i32
  }
  func.func @transform_1(%arg0: i32, %arg1: i32) -> (i32, i32, i32) {
    %c0_i32 = arith.constant 0 : i32
    %c0_i32_0 = arith.constant 0 : i32
    %c0_i32_1 = arith.constant 0 : i32
    return %arg0, %c0_i32, %c0_i32_0 : i32, i32, i32
  }
  func.func @transform_2(%arg0: i32, %arg1: i32) -> (i32, i32) {
    %c0_i32 = arith.constant 0 : i32
    %c0_i32_0 = arith.constant 0 : i32
    %c0_i32_1 = arith.constant 0 : i32
    return %c0_i32, %c0_i32_0 : i32, i32
  }
  func.func @transform_3(%arg0: i32, %arg1: i32) -> (i32, i32, i32) {
    %c0_i32 = arith.constant 0 : i32
    %c0_i32_0 = arith.constant 0 : i32
    return %arg0, %arg1, %c0_i32 : i32, i32, i32
  }
  func.func @transform_4(%arg0: i32, %arg1: i32) -> (i32, i32, i32) {
    %c0_i32 = arith.constant 0 : i32
    %c0_i32_0 = arith.constant 0 : i32
    return %arg0, %arg1, %c0_i32 : i32, i32, i32
  }
  func.func @transform_5(%arg0: i32, %arg1: i32) -> (i32, i32, i32) {
    %c0_i32 = arith.constant 0 : i32
    %c0_i32_0 = arith.constant 0 : i32
    return %arg0, %arg1, %c0_i32 : i32, i32, i32
  }
}

</mosaic_0001>

<bundles_post_ra>
// kernel: tpu_custom_call.1
= control target key start
LH: loop header
LB: loop body
LE: loop exit
PB: predicated region body
PF: predicated region fallthrough
CT: control target
= control target key end

     0   :  { %s1658_s0 = inlined_call_operand.hbm [shape: bf16[8,36], index: 0, kind: input, shape index: {}]   ;;  %s1659_s1 = inlined_call_operand.hbm [shape: bf16[2,4,290], index: 1, kind: input, shape index: {}]   ;;  %s1660_s2 = inlined_call_operand.hbm [shape: f32[9,256], index: 2, kind: input, shape index: {}]   ;;  %s1661_s3 = inlined_call_operand.hbm [shape: bf16[2,8,256], index: 3, kind: output, shape index: {0}]   ;;  %s1662_s4 = inlined_call_operand.vmem [shape: f32[2,8,1], index: 4, kind: output, shape index: {1}]   ;;  %s1663_s5 = inlined_call_operand.vmem [shape: f32[2,8,1], index: 5, kind: output, shape index: {2}]  }
   0x1   :  { %1667 = sst [smem:[#allocation14_spill]] %s1658_s0 }
   0x2   :  { %11 = vsyncpa [#allocation4], 0 }
   0x3   :  { %12 = vsyncpa [#allocation7], 0 }
   0x4   :  { %14 = vsyncpa [#allocation7 + $0x1], 0 }
   0x5   :  { %15 = vsyncpa [#allocation5], 0 }
   0x6   :  { %17 = vsyncpa [#allocation5 + $0x1], 0  ;;  %s1392_s18 = smov 0   ;;  %s1394_s19 = smov 0  }
   0x7   :  { %s1396_s20 = smov 0   ;;  %s1398_s21 = smov 0  }
   0x8   :  { %s1400_s22 = smov 0   ;;  %s1402_s23 = smov 0  }
   0x9 LB: > { %s1423_s24 = sadd.s32 4294967295, %s1339_s23   ;;  %s999_s25 = sadd.s32 4294967294, %s1339_s23   ;;  %s1339_s23 = sphi %s1402_s23, %s23_s23   ;;  %s1335_s22 = sphi %s1400_s22, %s1687_s22   ;;  %s1331_s21 = sphi %s1398_s21, %s1686_s21   ;;  %s1327_s20 = sphi %s1396_s20, %s1685_s20   ;;  %s1323_s19 = sphi %s1394_s19, %s1684_s19   ;;  %s1319_s18 = sphi %s1392_s18, %s1683_s18  }
   0xa   : > { %p81_p0 = scmp.ne.s32.totalorder %s1323_s19, %s1319_s18  ;;  %p1664_p1 = scmp.eq.s32.totalorder %s1423_s24, 0 }
   0xb   : > { %p134_p2 = scmp.eq.s32.totalorder %s999_s25, 1  ;;  %p1000_p4 = scmp.ge.s32.totalorder %s1339_s23, 1 }
   0xc   : > { %p1431_p3 = por %p1664_p1, %p81_p0  ;;  %p197_p6 = scmp.lt.s32.totalorder %s1339_s23, 3 }
   0xd   : > { %p1436_p5 = por %p134_p2, %p81_p0  ;;  %s1341_s29 = smov [#allocation8]  }
   0xe   : > { %s1668_s26 = scalar_select %p1431_p3, 1, 0 }
   0xf   : > { %s1669_s27 = scalar_select %p1436_p5, 1, 0 }
  0x10   : > { %p1441_p7 = pnand %p1000_p4, %p197_p6  ;;  %s222_s30 = sshll.u32 %s1341_s29, 4  ;;  %s223_s30 = int_to_ptr.vmem [resolvable:$true] %s222_s30 }
  0x11   : > { %s1342_s7 = smov [#allocation3]   ;;  %s1163_s11 = scalar_lea.hbm %s1660_s2, 512 }
  0x12   : > { %s1670_s28 = scalar_select %p1441_p7, 1, 0 }
  0x13   : > { %p1064_p8 = pneg %p1441_p7  ;;  %s212_s8 = sshll.u32 %s1342_s7, 4  ;;  %s213_s8 = int_to_ptr.vmem [resolvable:$true] %s212_s8 }
  0x14   : > { %p1164_p11 = scmp.ne.s32.totalorder %s1660_s2, %s1163_s11  ;;  %p1170_p2 = scmp.lt.u32.totalorder %s1163_s11, %s1660_s2 }
  0x15   : > { %p1450_p10 = pnand %p1064_p8, %p1664_p1 }
  0x17   : > { %p1165_p12 = pneg %p1450_p10 }
  0x19   : > { %p1166_p13 = pnand %p1165_p12, %p1164_p11 }
  0x1b   : > { %p1167_p0 = pneg %p1166_p13 }
  0x1d   : > { %p1172_p4 = pnand %p1170_p2, %p1167_p0 }
  0x1f   : > { %1175 = shalt.err (!%p1172_p4)
}
  0x20   : > { %s1176_s16 = scalar_lea.vmem %s223_s30, 512  ;;  %p1184_p1 = scmp.lt.s32.totalorder %s223_s30, %s223_s30 }
  0x21   : > { %p1177_p6 = scmp.ne.s32.totalorder %s223_s30, %s1176_s16  ;;  %p1185_p5 = scmp.lt.s32.totalorder %s1176_s16, %s1176_s16 }
  0x23   : > { %p1179_p8 = pnand %p1177_p6, %p1165_p12  ;;  %p1186_p3 = por %p1185_p5, %p1184_p1 }
  0x25   : > { %p1180_p9 = pneg %p1179_p8 }
  0x27   : > { %p1187_p7 = pnand %p1186_p3, %p1180_p9 }
  0x29   : > { %1190 = shalt.err (!%p1187_p7)
}
  0x2a   : > { %s1343_s17 = smov 256   ;;  %s1344_s25 = smov 16  }
  0x2b   : > { %1070 = dma.hbm_to_vmem [thread:$0]  (!%p1450_p10), %s1660_s2, 512, %s223_s30, [#allocation7], %s1343_s17, %s1343_s17, %s1344_s25  }
  0x2c   : > { %s1672_s0 = sld [smem:[#allocation14_spill]] }
  0x32   : > { %s1191_s11 = scalar_lea.hbm %s1672_s0, 64 }
  0x33   : > { %p1192_p1 = scmp.ne.s32.totalorder %s1672_s0, %s1191_s11  ;;  %p1198_p7 = scmp.lt.u32.totalorder %s1191_s11, %s1672_s0 }
  0x35   : > { %p1194_p3 = pnand %p1192_p1, %p1165_p12 }
  0x37   : > { %p1195_p5 = pneg %p1194_p3 }
  0x39   : > { %p1200_p9 = pnand %p1198_p7, %p1195_p5 }
  0x3b   : > { %1203 = shalt.err (!%p1200_p9)
}
  0x3c   : > { %s1204_s30 = scalar_lea.vmem %s213_s8, 64  ;;  %p1212_p2 = scmp.lt.s32.totalorder %s213_s8, %s213_s8 }
  0x3d   : > { %p1205_p11 = scmp.ne.s32.totalorder %s213_s8, %s1204_s30  ;;  %p1213_p4 = scmp.lt.s32.totalorder %s1204_s30, %s1204_s30 }
  0x3f   : > { %p1207_p13 = pnand %p1205_p11, %p1165_p12  ;;  %p1214_p6 = por %p1213_p4, %p1212_p2 }
  0x41   : > { %p1208_p0 = pneg %p1207_p13 }
  0x43   : > { %p1215_p8 = pnand %p1214_p6, %p1208_p0 }
  0x45   : > { %1218 = shalt.err (!%p1215_p8)
}
  0x46   : > { %1067 = dma.hbm_to_vmem [thread:$0]  (!%p1450_p10), %s1672_s0, 64, %s213_s8, [#allocation4]  }
  0x47   : > { %p128_p12 = scmp.eq.s32.totalorder %s1423_s24, 1  ;;  %s35_s25 = sadd.s32 1, %s1335_s22 }
  0x48   : > { %p37_p1 = scmp.ge.s32.totalorder %s35_s25, 2  ;;  %p75_p3 = scmp.ne.s32.totalorder %s1327_s20, %s1323_s19 }
  0x49   : > { %s68_s6 = sadd.s32 1, %s1327_s20  ;;  %p76_p5 = scmp.eq.s32.totalorder %s1339_s23, 0 }
  0x4a   : > { %s1689_s25 = smov (%p37_p1, %s35_s25), 0  ;;  %p1504_p7 = por %p128_p12, %p75_p3 }
  0x4b   : > { %p1081_p9 = scmp.lt.s32.totalorder %s1339_s23, 2  ;;  %s65_s7 = ssub.s32 %s1335_s22, %s1689_s25 }
  0x4c   : > { %p77_p11 = por %p76_p5, %p75_p3  ;;  %p66_p13 = scmp.eq.s32.totalorder %s65_s7, 0 }
  0x4d   : > { %s236_s9 = sand.u32 1, %s1339_s23   ;;  %s238_s8 = sand.u32 1, %s1327_s20  }
  0x4e   : > { %s1050_s10 = smul.u32 96, %s1335_s22  ;;  %p1517_p10 = pnand %p1081_p9, %p77_p11 }
  0x4f   : > { %s1515_s11 = scalar_select %p66_p13, %s1327_s20, %s68_s6  }
  0x50   : > { %s1049_s12 = smul.u32 6, %s238_s8  ;;  %s1524_s30 = scalar_lea.hbm %s1659_s1, %s1050_s10 }
  0x51   : > { %s237_s6 = scalar_lea.sflag [#allocation7], %s236_s9  ;;  %s1219_s7 = scalar_lea.hbm %s1524_s30, 96 }
  0x52   : > { %s240_s16 = scalar_lea.vmem [#allocation6], %s1049_s12  ;;  %p1220_p0 = scmp.ne.s32.totalorder %s1524_s30, %s1219_s7 }
  0x53   : > { %s248_s17 = sshll.u32 %s240_s16, 4  ;;  %p1221_p2 = pneg %p1517_p10  ;;  %s1526_s17 = int_to_ptr.vmem [resolvable:$true] %s248_s17 }
  0x54   : > { %s1224_s14 = scalar_lea.hbm %s1659_s1, 192  ;;  %p1225_p8 = scmp.lt.u32.totalorder %s1524_s30, %s1659_s1 }
  0x55   : > { %p1222_p4 = pnand %p1221_p2, %p1220_p0  ;;  %p1226_p12 = scmp.lt.u32.totalorder %s1224_s14, %s1219_s7 }
  0x56   : > { %p1228_p3 = scmp.lt.u32.totalorder %s1219_s7, %s1524_s30 }
  0x57   : > { %p1223_p6 = pneg %p1222_p4  ;;  %p1227_p1 = por %p1226_p12, %p1225_p8 }
  0x59   : > { %p1229_p5 = por %p1228_p3, %p1227_p1 }
  0x5b   : > { %p1230_p9 = pnand %p1229_p5, %p1223_p6 }
  0x5d   : > { %1233 = shalt.err (!%p1230_p9)
}
  0x5e   : > { %s1234_s9 = scalar_lea.vmem %s1526_s17, 96  ;;  %s1345_s12 = smov [#allocation6]  }
  0x5f   : > { %p1235_p11 = scmp.ne.s32.totalorder %s1526_s17, %s1234_s9  ;;  %s1239_s16 = sshll.u32 %s1345_s12, 4  ;;  %s1240_s16 = int_to_ptr.vmem [resolvable:$false] %s1239_s16 }
  0x60   : > { %s1241_s0 = scalar_lea.vmem %s1240_s16, 192  ;;  %p1242_p4 = scmp.lt.s32.totalorder %s1526_s17, %s1240_s16 }
  0x61   : > { %p1237_p13 = pnand %p1235_p11, %p1221_p2  ;;  %p1243_p8 = scmp.lt.s32.totalorder %s1241_s0, %s1234_s9 }
  0x63   : > { %p1238_p0 = pneg %p1237_p13  ;;  %p1244_p12 = por %p1243_p8, %p1242_p4 }
  0x65   : > { %p1245_p1 = pnand %p1244_p12, %p1238_p0 }
  0x67   : > { %1248 = shalt.err (!%p1245_p1)
}
  0x68   : > { %1074 = dma.hbm_to_vmem [thread:$0]  (!%p1517_p10), %s1524_s30, 96, %s1526_s17, %s237_s6  }
  0x69   : > { %p1675_p6 = scmp.ne.s32.totalorder %s1670_s28, 0 }
  0x6a   : > { %p1676_p2 = scmp.eq.s32.totalorder (!%p1675_p6), %s1423_s24, 0 }
  0x6b   : > { %257 = sbr.rel (%p1675_p6) target bundleno = 770 (0x302), region = 32 }
  0x72   : > { %1302 = dma.done.wait (%p1676_p2), [#allocation4], 64   ;;  %p1677_p3 = pmov %p1676_p2 }
  0x73   : > { %s263_s7 = sand.u32 1, %s1423_s24   ;;  %s1561_s8 = sand.u32 1, %s1323_s19  }
  0x74   : > { %1304 = vsyncadd (%p1677_p3), [#allocation4], 4294967232  ;;  %s1051_s13 = smul.u32 6, %s1561_s8  ;;  %s264_s10 = scalar_lea.sflag [#allocation7], %s263_s7 }
  0x75   : > { %p1678_p10 = scmp.ne.s32.totalorder %s1668_s26, 0 }
  0x76   : > { %s1564_s14 = scalar_lea.vmem [#allocation6], %s1051_s13 }
  0x77   : > { %1306 = dma.done.wait (%p1678_p10), %s264_s10, 96  }
  0x78   : > { %1308 = vsyncadd (%p1678_p10), %s264_s10, 4294967200  ;;  %p1679_p5 = pmov %p1676_p2 }
  0x79   : > { %p1680_p9 = pmov %p1676_p2 }
  0x7a   : > { %1310 = dma.done.wait (%p1679_p5), [#allocation7], 512  }
  0x7b   : > { %1312 = vsyncadd (%p1680_p9), [#allocation7], 4294966784  ;;  %v335_v0 = vlaneseq  ;;  %v1346_v4 = vmov 1983009808   ;;  %s1347_s24 = smov 18   ;;  %s1348_s26 = smov 16  }
  0x7c   : > { %v362_v5 = vunpack.c.l.s4 %v1346_v4  ;;  %v519_v6 = vld [vmem:[#allocation8 + $0x5] ss:$8 sm:$0x3]  ;;  %v440_v9 = vld [vmem:[#allocation8 + $0x3] ss:$8 sm:$0x3] }
  0x7d   : > { %v336_v1 = vshrl.u32 %v335_v0, 7  ;;  %v570_v10 = vld [vmem:[#allocation8 + $0x6] ss:$8 sm:$0x3]  ;;  %v487_v26 = vld [vmem:[%s1564_s14] sm:$0x3f] }
  0x7e   : > { %v391_v15 = vld [vmem:[#allocation8 + $0x2] ss:$8 sm:$0x3]  ;;  %v647_v19 = vld [vmem:[#allocation8 + $0x10] ss:$8 sm:$0x3]  ;;  %v363_v20 = vunpack.c.0.s8 %v362_v5  ;;  %v489_v36 = vcombine.high %v487_v26, %v487_v26 }
  0x7f   : > { %v1574_v2 = vsub.s32 0, %v336_v1  ;;  %v341_v3 = vsub.s32 1, %v336_v1  ;;  %v358_v28 = vld [vmem:[%s1564_s14] sm:$0x3f]  ;;  %s1349_s28 = smov 32   ;;  %s1350_s30 = smov 2  }
  0x80   : > { %v366_v27 = vsub.s32 %v363_v20, %v336_v1  ;;  %v360_v30 = vcombine.low %v358_v28, %v358_v28  ;;  %v615_v32 = vld [vmem:[%s1564_s14] sm:$0x3f]  ;;  %s1351_s17 = smov 111   ;;  %s1352_s6 = smov 34   ;;  %vm454_vm0 = vcmask 130048   ;;  %vm584_vm1 = vcmask 261120  }
  0x81   : > { %v524_v7 = vrot.slane %v519_v6, %v1574_v2  ;;  %v528_v8 = vrot.slane %v519_v6, %v341_v3  ;;  %v445_v11 = vrot.slane %v440_v9, %v1574_v2  ;;  %v449_v12 = vrot.slane %v440_v9, %v341_v3  ;;  %s1353_s15 = smov 127   ;;  %s1354_s9 = smov 95   ;;  %v333_v40 = vld [vmem:[#allocation8] ss:$8 sm:$0x3] }
  0x82   : > { %v575_v13 = vrot.slane %v570_v10, %v1574_v2  ;;  %v579_v14 = vrot.slane %v570_v10, %v341_v3  ;;  %v396_v17 = vrot.slane %v391_v15, %v1574_v2  ;;  %v400_v18 = vrot.slane %v391_v15, %v341_v3  ;;  %v331_v43 = vld [vmem:[%s1564_s14] sm:$0xf]  ;;  %s1355_s12 = smov 126   ;;  %s1356_s16 = smov 96  }
  0x83   : > { %v529_v16 = vcombine.low %v524_v7, %v528_v8  ;;  %v450_v21 = vcombine.low %v445_v11, %v449_v12  ;;  %v652_v24 = vrot.slane %v647_v19, %v1574_v2  ;;  %v656_v25 = vrot.slane %v647_v19, %v341_v3  ;;  %v436_v51 = vld [vmem:[%s1564_s14] sm:$0x3f]  ;;  %s1357_s0 = smov 112   ;;  %s1358_s7 = smov 110  }
  0x84   : > { %v580_v22 = vcombine.low %v575_v13, %v579_v14  ;;  %v401_v23 = vcombine.low %v396_v17, %v400_v18  ;;  %v496_v29 = vrot.slane %v487_v26, %v366_v27  ;;  %v367_v33 = vrot.slane %v360_v30, %v366_v27  ;;  %v387_v52 = vld [vmem:[%s1564_s14] sm:$0x3f]  ;;  %s1359_s13 = smov 94   ;;  %s1008_s10 = sshll.u32 %s1561_s8, 3 }
  0x85   : > { %530 = vrot.lane.b32.xlu1 %v529_v16, %s1347_s24  ;;  %451 = vrot.lane.b32.xlu0 %v450_v21, %s1348_s26  ;;  %v657_v31 = vcombine.low %v652_v24, %v656_v25  ;;  %v617_v34 = vcombine.low %v615_v32, %v615_v32  ;;  %v374_v35 = vrot.slane %v358_v28, %v366_v27  ;;  %v332_v44 = vunpack.c.l.bf16 %v331_v43  ;;  %v566_v54 = vld [vmem:[%s1564_s14] sm:$0x3f]  ;;  %s1048_s24 = sshll.u32 %s1331_s21, 7 }
  0x86   : > { %v503_v38 = vrot.slane %v489_v36, %v366_v27  ;;  %v631_v39 = vrot.slane %v615_v32, %v366_v27  ;;  %v338_v41 = vrot.slane %v333_v40, %v1574_v2  ;;  %v342_v42 = vrot.slane %v333_v40, %v341_v3  ;;  %v515_v59 = vld [vmem:[%s1564_s14] sm:$0x3f] }
  0x87   : > { %v624_v37 = vrot.slane %v617_v34, %v366_v27  ;;  %v437_v55 = vunpack.c.l.bf16 %v436_v51  ;;  %v568_v56 = vunpack.c.h.bf16 %v566_v54  ;;  %vm405_vm2 = vcmask 15360   ;;  %v643_v21 = vld [vmem:[%s1564_s14] sm:$0x3f]  ;;  %s293_s14 = scalar_lea.vmem [#allocation9], %s1008_s10 }
  0x88   : > { %v343_v45 = vcombine.low %v338_v41, %v342_v42  ;;  %v389_v58 = vunpack.c.h.bf16 %v387_v52  ;;  %v567_v61 = vunpack.c.l.bf16 %v566_v54  ;;  %v388_v0 = vunpack.c.l.bf16 %v387_v52 }
  0x89   : > { %581 = vrot.lane.b32.xlu1 %v580_v22, %s1349_s28  ;;  %402 = vrot.lane.b32.xlu0 %v401_v23, %s1350_s30  ;;  %vm533_vm3 = vcmask 146432   ;;  %v438_v1 = vunpack.c.h.bf16 %v436_v51  ;;  %v516_v5 = vunpack.c.l.bf16 %v515_v59  ;;  %v517_v15 = vunpack.c.h.bf16 %v515_v59  ;;  %s1607_s30 = scalar_lea.hbm %s1661_s3, %s1048_s24 }
  0x8a   : > { %v345_v46 = vmul.f32 %v343_v45, %v332_v44  ;;  %vm383_vm4 = vcmask 1039360   ;;  %v644_v32 = vunpack.c.l.bf16 %v643_v21  ;;  %vm661_vm5 = vcmask 277504  }
  0x8b   : > { %vm381_vm6 = vcmask 1043456   ;;  %vm511_vm7 = vcmask 908288   ;;  %vm639_vm8 = vcmask 777216   ;;  %vm432_vm9 = vcmask 1031168  }
  0x8c   : > { %v347_v47 = vcombine.high %v345_v46, %v345_v46  ;;  %vm611_vm10 = vcmask 785408   ;;  %vm483_vm11 = vcmask 916480   ;;  %vm562_vm12 = vcmask 900096  }
  0x8d   : > { %504 = vrot.lane.b32.xlu1 %v496_v29, %s1351_s17  ;;  %658 = vrot.lane.b32.xlu0 %v657_v31, %s1352_s6  ;;  %vm688_vm13 = vcmask 769024   ;;  %vm727_vm14 = vcmask 1041408   ;;  %vm723_vm15 = vcmask 293888   ;;  %s796_s6 = scalar_lea.sflag [#allocation5], %s1561_s8 }
  0x8e   : > { %v1036_v48 = vpack.c.bf16 %v347_v47, %v345_v46 }
  0x90   : > { %357 = vst [vmem:[#allocation2] sm:$0x33] %v1036_v48 }
  0x91   : > { %375 = vrot.lane.b32.xlu1 %v367_v33, %s1353_s15  ;;  %377 = vrot.lane.b32.xlu0 %v374_v35, %s1353_s15  ;;  %v645_v33 = vunpack.c.h.bf16 %v643_v21 }
  0x95   : > { %632 = vrot.lane.b32.xlu1 %v624_v37, %s1354_s9  ;;  %506 = vrot.lane.b32.xlu0 %v503_v38, %s1351_s17  ;;  %s826_s17 = sshll.u32 %s293_s14, 4  ;;  %s827_s17 = int_to_ptr.vmem [resolvable:$true] %s826_s17 }
  0x96   : > { %s1249_s15 = scalar_lea.vmem %s827_s17, 128 }
  0x97   : > { %p1250_p11 = scmp.ne.s32.totalorder %s827_s17, %s1249_s15 }
  0x99   : > { %634 = vrot.lane.b32.xlu0 %v631_v39, %s1354_s9  ;;  %p1251_p13 = pnand %p1250_p11, %p1504_p7  ;;  %s1361_s9 = smov [#allocation9]  }
  0x9b   : > { %p1252_p0 = pneg %p1251_p13 }
  0xf7   : > { %v531_v49 = vpop.permute.xlu1 %530  ;;  %v452_v50 = vpop.permute.xlu0 %451 }
  0xf8   : > { %v453_v53 = vrot.slane %v452_v50, 4  ;;  %v532_v60 = vrot.slane %v531_v49, 4 }
  0xfa   : > { %v455_v2 = vsel %vm454_vm0, %v453_v53, %v452_v50  ;;  %v534_v10 = vsel %vm533_vm3, %v532_v60, %v531_v49  ;;  %v459_v16 = vmul.f32 %v453_v53, %v438_v1  ;;  %v538_v28 = vmul.f32 %v532_v60, %v517_v15 }
  0xfb   : > { %v582_v57 = vpop.permute.xlu1 %581  ;;  %v403_v63 = vpop.permute.xlu0 %402  ;;  %v458_v11 = vmul.f32 %v455_v2, %v437_v55  ;;  %v537_v19 = vmul.f32 %v534_v10, %v516_v5 }
  0xfc   : > { %v583_v62 = vrot.slane %v582_v57, 4  ;;  %v404_v3 = vrot.slane %v403_v63, 4  ;;  %v1040_v29 = vpack.c.bf16 %v459_v16, %v459_v16  ;;  %v1042_v42 = vpack.c.bf16 %v538_v28, %v538_v28 }
  0xfd   : > { %v461_v23 = vcombine.high %v458_v11, %v458_v11  ;;  %v540_v36 = vcombine.high %v537_v19, %v537_v19 }
  0xfe   : > { %v585_v4 = vsel %vm584_vm1, %v583_v62, %v582_v57  ;;  %v589_v6 = vmul.f32 %v583_v62, %v568_v56  ;;  %v406_v7 = vsel %vm405_vm2, %v404_v3, %v403_v63  ;;  %v410_v8 = vmul.f32 %v404_v3, %v389_v58 }
  0xff   : > { %v505_v9 = vpop.permute.xlu1 %504  ;;  %v588_v12 = vmul.f32 %v585_v4, %v567_v61  ;;  %v409_v13 = vmul.f32 %v406_v7, %v388_v0  ;;  %v659_v14 = vpop.permute.xlu0 %658  ;;  %v1039_v38 = vpack.c.bf16 %v461_v23, %v458_v11  ;;  %v475_v44 = vrot.slane %v1040_v29, 6 }
 0x100   : > { %v1038_v17 = vpack.c.bf16 %v410_v8, %v410_v8  ;;  %v1044_v20 = vpack.c.bf16 %v589_v6, %v589_v6  ;;  %v660_v30 = vrot.slane %v659_v14, 4  ;;  %v508_v34 = vrot.slane %v505_v9, 4 }
 0x101   : > { %v412_v18 = vcombine.high %v409_v13, %v409_v13  ;;  %v591_v24 = vcombine.high %v588_v12, %v588_v12  ;;  %v474_v50 = vrot.slane %v1039_v38, 6  ;;  %v1041_v51 = vpack.c.bf16 %v540_v36, %v537_v19 }
 0x102   : > { %427 = vrot.lane.b32.xlu0 %v1038_v17, %s1355_s12  ;;  %v662_v43 = vsel %vm661_vm5, %v660_v30, %v659_v14  ;;  %v666_v46 = vmul.f32 %v660_v30, %v645_v33  ;;  %v554_v54 = vrot.slane %v1042_v42, 6  ;;  %v1360_v62 = vmov 0  }
 0x103   : > { %v376_v22 = vpop.permute.xlu1 %375  ;;  %v1037_v25 = vpack.c.bf16 %v412_v18, %v409_v13  ;;  %v378_v26 = vpop.permute.xlu0 %377  ;;  %v1043_v37 = vpack.c.bf16 %v591_v24, %v588_v12  ;;  %v665_v49 = vmul.f32 %v662_v43, %v644_v32  ;;  %v553_v59 = vrot.slane %v1041_v51, 6  ;;  %766 = vmatprep.mubr.bf16.mxu0 %v1360_v62 }
 0x104   : > { %v379_v27 = vrot.slane %v376_v22, 4  ;;  %v380_v31 = vrot.slane %v378_v26, 4  ;;  %v1046_v56 = vpack.c.bf16 %v666_v46, %v666_v46 }
 0x105   : > { %425 = vrot.lane.b32.xlu1 %v1037_v25, %s1355_s12  ;;  %v668_v58 = vcombine.high %v665_v49, %v665_v49  ;;  %s1253_s12 = sshll.u32 %s1361_s9, 4  ;;  %s1254_s12 = int_to_ptr.vmem [resolvable:$false] %s1253_s12 }
 0x106   : > { %606 = vrot.lane.b32.xlu0 %v1044_v20, %s1356_s16  ;;  %v382_v35 = vsel %vm381_vm6, %v379_v27, %v380_v31  ;;  %p1256_p4 = scmp.lt.s32.totalorder %s827_s17, %s1254_s12 }
 0x107   : > { %v507_v39 = vpop.permute.xlu0 %506  ;;  %v384_v40 = vsel %vm383_vm4, %v376_v22, %v382_v35  ;;  %v633_v41 = vpop.permute.xlu1 %632  ;;  %v1045_v61 = vpack.c.bf16 %v668_v58, %v665_v49 }
 0x108   : > { %v509_v45 = vrot.slane %v507_v39, 4  ;;  %386 = vst [vmem:[#allocation2] sm:$0xcc] %v384_v40  ;;  %v636_v48 = vrot.slane %v633_v41, 4 }
 0x109   : > { %604 = vrot.lane.b32.xlu1 %v1043_v37, %s1356_s16  ;;  %v692_v37 = vld [vmem:[#allocation3] sm:$0xf]  ;;  %s1255_s16 = scalar_lea.vmem %s1254_s12, 256 }
 0x10a   : > { %478 = vrot.lane.b32.xlu0 %v475_v44, %s1357_s0  ;;  %v510_v47 = vsel %vm381_vm6, %v508_v34, %v509_v45  ;;  %p1257_p8 = scmp.lt.s32.totalorder %s1255_s16, %s1249_s15 }
 0x10b   : > { %v512_v52 = vsel %vm511_vm7, %v505_v9, %v510_v47  ;;  %v635_v53 = vpop.permute.xlu0 %634 }
 0x10c   : > { %514 = vst [vmem:[#allocation2 + $0x10] sm:$0x33] %v512_v52  ;;  %v637_v55 = vrot.slane %v635_v53, 4  ;;  %p1258_p12 = por %p1257_p8, %p1256_p4 }
 0x10d   : > { %476 = vrot.lane.b32.xlu1 %v474_v50, %s1357_s0 }
 0x10e   : > { %557 = vrot.lane.b32.xlu0 %v554_v54, %s1358_s7  ;;  %v638_v57 = vsel %vm381_vm6, %v636_v48, %v637_v55  ;;  %p1259_p1 = pnand %p1258_p12, %p1252_p0 }
 0x10f   : > { %v640_v60 = vsel %vm639_vm8, %v633_v41, %v638_v57 }
 0x110   : > { %642 = vst [vmem:[#allocation2 + $0x18] sm:$0xcc] %v640_v60 }
 0x111   : > { %555 = vrot.lane.b32.xlu1 %v553_v59, %s1358_s7 }
 0x112   : > { %683 = vrot.lane.b32.xlu0 %v1046_v56, %s1359_s13 }
 0x115   : > { %681 = vrot.lane.b32.xlu1 %v1045_v61, %s1359_s13 }
 0x174   : > { %v428_v63 = vpop.permute.xlu0 %427 }
 0x175   : > { %v430_v1 = vrot.slane %v428_v63, 4 }
 0x177   : > { %v426_v0 = vpop.permute.xlu1 %425 }
 0x178   : > { %v429_v2 = vrot.slane %v426_v0, 4  ;;  %v607_v3 = vpop.permute.xlu0 %606 }
 0x179   : > { %v609_v7 = vrot.slane %v607_v3, 4 }
 0x17a   : > { %v431_v4 = vsel %vm381_vm6, %v429_v2, %v430_v1 }
 0x17b   : > { %v433_v5 = vsel %vm432_vm9, %v426_v0, %v431_v4  ;;  %v605_v6 = vpop.permute.xlu1 %604 }
 0x17c   : > { %435 = vst [vmem:[#allocation2 + $0x8] sm:$0x33] %v433_v5  ;;  %v608_v8 = vrot.slane %v605_v6, 4  ;;  %v479_v9 = vpop.permute.xlu0 %478 }
 0x17d   : > { %v481_v13 = vrot.slane %v479_v9, 4 }
 0x17e   : > { %v610_v10 = vsel %vm381_vm6, %v608_v8, %v609_v7 }
 0x17f   : > { %v612_v11 = vsel %vm611_vm10, %v605_v6, %v610_v10  ;;  %v477_v12 = vpop.permute.xlu1 %476 }
 0x180   : > { %614 = vst [vmem:[#allocation2 + $0x18] sm:$0x33] %v612_v11  ;;  %v480_v14 = vrot.slane %v477_v12, 4  ;;  %v558_v15 = vpop.permute.xlu0 %557 }
 0x181   : > { %v560_v19 = vrot.slane %v558_v15, 4 }
 0x182   : > { %v482_v16 = vsel %vm381_vm6, %v480_v14, %v481_v13 }
 0x183   : > { %v484_v17 = vsel %vm483_vm11, %v477_v12, %v482_v16  ;;  %v556_v18 = vpop.permute.xlu1 %555 }
 0x184   : > { %486 = vst [vmem:[#allocation2 + $0x8] sm:$0xcc] %v484_v17  ;;  %v559_v20 = vrot.slane %v556_v18, 4  ;;  %v684_v21 = vpop.permute.xlu0 %683 }
 0x185   : > { %v686_v25 = vrot.slane %v684_v21, 4 }
 0x186   : > { %v561_v22 = vsel %vm381_vm6, %v559_v20, %v560_v19 }
 0x187   : > { %v563_v23 = vsel %vm562_vm12, %v556_v18, %v561_v22  ;;  %v682_v24 = vpop.permute.xlu1 %681 }
 0x188   : > { %565 = vst [vmem:[#allocation2 + $0x10] sm:$0xcc] %v563_v23  ;;  %v685_v26 = vrot.slane %v682_v24, 4 }
 0x18a   : > { %v687_v27 = vsel %vm381_vm6, %v685_v26, %v686_v25 }
 0x18b   : > { %v689_v28 = vsel %vm688_vm13, %v682_v24, %v687_v27  ;;  %v1155_v29 = vld [vmem:[#allocation2 + $0x4] ss:$8 sps:$4 sm:$0xff]   ;;  %v1157_v30 = vld [vmem:[#allocation2] ss:$8 sps:$4 sm:$0xff]  }
 0x18c   : > { %691 = vst [vmem:[#allocation2 + $0x20] sm:$0x33] %v689_v28  ;;  %734 = vmatprep.subr.bf16.mxu0 %v1155_v29 }
 0x18d   : > { %735 = vmatpush1.bf16.msra.mxu0 %v1157_v30 }
 0x18f   : > { %v1158_v31 = vld [vmem:[#allocation2 + $0x14] ss:$8 sps:$4 sm:$0xff]   ;;  %v1160_v32 = vld [vmem:[#allocation2 + $0x10] ss:$8 sps:$4 sm:$0xff]  }
 0x190   : > { %736 = vmatprep.subr.bf16.mxu0 %v1158_v31 }
 0x191   : > { %737 = vmatpush1.bf16.msra.mxu0 %v1160_v32 }
 0x193   : > { %v697_v33 = vld [vmem:[#allocation2 + $0x20] sm:$0x33] }
 0x194   : > { %v1027_v34 = vcombine.high %v697_v33, %v697_v33  ;;  %v1026_v35 = vcombine.low %v697_v33, %v697_v33 }
 0x196   : > { %1028 = vmatprep.subr.msk.bf16.mxu0 %vm727_vm14, %v1027_v34  ;;  %v729_v36 = vsel %vm727_vm14, %v1026_v35, 0 }
 0x197   : > { %739 = vmatpush1.bf16.msra.mxu0 %v729_v36 }
 0x19a   : > { %1029 = vmatmul.mubr.msk.bf16.vlgmr.msra.gmra.mrb[0].mxu0 %vm723_vm15, %v692_v37 }
 0x26d   : > { %v768_v38 = vpop.f32.mrb[0].mxu0 }
 0x26e   : > { %v770_v39 = vpop.f32.mrb[1].mxu0  ;;  %v789_v40 = vmul.f32 %v768_v38, %v768_v38 }
 0x26f   : > { %v1047_v41 = vpack.c.bf16 %v770_v39, %v768_v38  ;;  %v772_v42 = vpop.f32.mrb[2].mxu0  ;;  %v784_v43 = vadd.f32 %v770_v39, %v768_v38  ;;  %v790_v44 = vmul.f32 %v770_v39, %v770_v39 }
 0x270   : > { %v773_v45 = vpop.f32.mrb[3].mxu0 }
 0x271   : > { %785 = vadd.xlane.f32.xlu1 %v784_v43  ;;  %v791_v46 = vadd.f32 %v790_v44, %v789_v40  ;;  %783 = vst [vmem:[%s293_s14] sm:$0xff] %v1047_v41 }
 0x273   : > { %792 = vadd.xlane.f32.xlu0 %v791_v46 }
 0x274   : > { %1262 = shalt.err (!%p1259_p1)
}
 0x275   : > { %s1263_s8 = scalar_lea.hbm %s1607_s30, 128  ;;  %s1267_s13 = scalar_lea.hbm %s1661_s3, 256 }
 0x276   : > { %p1264_p6 = scmp.ne.s32.totalorder %s1607_s30, %s1263_s8  ;;  %p1268_p10 = scmp.lt.u32.totalorder %s1607_s30, %s1661_s3 }
 0x277   : > { %p1269_p5 = scmp.lt.u32.totalorder %s1267_s13, %s1263_s8  ;;  %p1271_p11 = scmp.lt.u32.totalorder %s1263_s8, %s1607_s30 }
 0x278   : > { %p1265_p2 = pnand %p1264_p6, %p1504_p7 }
 0x279   : > { %p1270_p9 = por %p1269_p5, %p1268_p10 }
 0x27a   : > { %p1266_p3 = pneg %p1265_p2 }
 0x27b   : > { %p1272_p13 = por %p1271_p11, %p1270_p9 }
 0x27d   : > { %p1273_p0 = pnand %p1272_p13, %p1266_p3 }
 0x27f   : > { %1276 = shalt.err (!%p1273_p0)
}
 0x280   : > { %1062 = dma.vmem_to_hbm [thread:$0]  (%p1504_p7), %s827_s17, 128, %s1607_s30, %s796_s6   ;;  %vm787_vm0 = vcmask 7168  }
 0x281   : > { %p312_p4 = scmp.lt.s32.totalorder %s1331_s21, 1 }
 0x283   : > { %s1691_s21 = smov (!%p312_p4, %s1331_s21), 1 }
 0x284   : > { %s1009_s24 = sshll.u32 %s1691_s21, 3 }
 0x285   : > { %s318_s15 = scalar_lea.vmem %s1662_s4, %s1009_s24  ;;  %s325_s16 = scalar_lea.vmem %s1663_s5, %s1009_s24 }
 0x2fe   : > { %v786_v47 = vpop.xlane.xlu1 %785 }
 0x2ff   : > { %788 = vst.msk [vmem:[%s318_s15] sm:$0xff] %vm787_vm0, %v786_v47 }
 0x300   : > { %v793_v48 = vpop.xlane.xlu0 %792 }
 0x301   : > { %794 = vst.msk [vmem:[%s325_s16] sm:$0xff] %vm787_vm0, %v793_v48 }
 0x302 PF: > { %s844_s29 = sand.u32 1, %s1319_s18   ;;  %p1681_p7 = scmp.ne.s32.totalorder %s1669_s27, 0 }
 0x303   : > { %p1682_p8 = scmp.ge.s32.totalorder %s1339_s23, 2  ;;  %s845_s21 = scalar_lea.sflag [#allocation5], %s844_s29 }
 0x305   : > { %p1076_p12 = pnand %p1682_p8, %p1681_p7 }
 0x307   : > { %1314 = dma.done.wait (!%p1076_p12), %s845_s21, 128  }
 0x308   : > { %1316 = vsyncadd (!%p1076_p12), %s845_s21, 4294967168  ;;  %s23_s23 = sadd.s32 1, %s1339_s23   ;;  %s1683_s18 = smov %s1323_s19 }
 0x309   : > { %p20_p1 = scmp.ge.s32.totalorder %s23_s23, 4   ;;  %s1684_s19 = smov %s1327_s20 }
 0x30a   : > { %s1685_s20 = smov %s1515_s11  ;;  %s1686_s21 = smov %s1335_s22 }
 0x30b   : > { %s1687_s22 = smov %s1689_s25  ;;  %22 = sbr.rel (!%p20_p1) target bundleno = 9 (0x9), region = 120 }
 0x312   :  { %870 = vsyncpa [#allocation4], 1 }
 0x313   :  { %872 = vsyncpa [#allocation4 + $0x1], 1 }
 0x314   :  { %873 = vsyncpa [#allocation7], 1 }
 0x315   :  { %875 = vsyncpa [#allocation7 + $0x1], 1 }
 0x316   :  { %876 = vsyncpa [#allocation5], 1 }
 0x317   :  { %878 = vsyncpa [#allocation5 + $0x1], 1 }

</bundles_post_ra>
